<compile_context>
chip_gen: v5e
topology: v5e:2x2
jax: 0.10.0
libtpu: 0.0.40
codegen_flags: <defaults>
</compile_context>

<pallas_src>
import jax
import jax.numpy as jnp
from jax.experimental import pallas as pl
from jax.experimental.pallas import tpu as pltpu

_LANE = 128


# ----------------------------- kernels ------------------------------------- #

def _bitparm_kernel(x_ref, sp_h_ref, b_ref, th_a_ref, o_ref):
    # x_ref/o_ref: (TR, TC).  Param refs: (TR, 1) float32, broadcast over lanes.
    t = x_ref[...].astype(jnp.float32) * sp_h_ref[...] + b_ref[...]
    o_ref[...] = (t + jnp.tanh(t) * th_a_ref[...]).astype(o_ref.dtype)


def _bitparm_final_kernel(x_ref, sp_h_ref, b_ref, o_ref):
    t = x_ref[...].astype(jnp.float32) * sp_h_ref[...] + b_ref[...]
    o_ref[...] = jax.nn.sigmoid(t).astype(o_ref.dtype)


# ----------------------------- helpers -------------------------------------- #

def _round_up(n, m):
    return ((n + m - 1) // m) * m


def _sublane_quantum(dtype):
    # 8 rows for 4-byte dtypes, 16 for 2-byte, 32 for 1-byte.
    return max(8, 32 // jnp.dtype(dtype).itemsize)


def _vmem_limit_bytes(default=48 << 20):
    # Generation-aware: leave headroom on v7x (64 MiB/TC) while still allowing
    # big tiles on v5e/v6e (128 MiB).
    try:
        info = pltpu.get_tpu_info()
        cap = getattr(info, "vmem_capacity_bytes", None)
        if cap:
            return int(min(64 << 20, (cap * 3) // 4))
    except Exception:
        pass
    return default


# ----------------------------- wrapper -------------------------------------- #

def bitparm_forward(x, h, b, a=None, *, final=False,
                    target_block_bytes=4 << 20, max_lane_tile=4096):
    """x: (N, C, H, W).  h, b, a: (1, C, 1, 1) (a may be None when final)."""
    N, C, H, W = x.shape
    R, HW = N * C, H * W
    x2 = x.reshape(R, HW)  # contiguous reshape; no copy

    subq = _sublane_quantum(x.dtype)
    itemsize = jnp.dtype(x.dtype).itemsize

    # Lane tile: multiple of 128 near the extent (no divisibility requirement;
    # the cdiv grid + masked edge stores handle ragged HW).
    TC = min(max_lane_tile, _round_up(HW, _LANE))
    # Row tile: aim for ~target_block_bytes per x block, multiple of the
    # sublane quantum, capped by the (rounded-up) row extent.
    TR = max(subq, (target_block_bytes // (itemsize * TC)) // subq * subq)
    TR = min(TR, _round_up(R, subq))

    gr, gc = pl.cdiv(R, TR), pl.cdiv(HW, TC)

    # v7x megacore: make sure there are >= 2 blocks to shard when possible.
    if gr * gc < 2:
        if R > subq:
            TR = _round_up(pl.cdiv(R, 2), subq)
            gr = pl.cdiv(R, TR)
        elif HW > _LANE:
            TC = _round_up(pl.cdiv(HW, 2), _LANE)
            gc = pl.cdiv(HW, TC)
    grid = (gr, gc)

    # Per-channel params -> per-row column vectors in float32 (no cast to the
    # activation dtype: the kernel accumulates in f32).  Rows are padded up to
    # the grid extent (tiny: (rows, 1) floats) so every param block is
    # in-bounds and finite.
    rows_padded = gr * TR

    def expand(p):
        pc = p.astype(jnp.float32).reshape(C)
        ex = jnp.broadcast_to(pc[None, :], (N, C)).reshape(R, 1)
        if rows_padded != R:
            ex = jnp.pad(ex, ((0, rows_padded - R), (0, 0)))
        return ex

    sp_h2 = expand(jax.nn.softplus(h.astype(jnp.float32)))
    b2 = expand(b)

    x_spec = pl.BlockSpec((TR, TC), lambda i, j: (i, j))
    out_spec = pl.BlockSpec((TR, TC), lambda i, j: (i, j))
    p_spec = pl.BlockSpec((TR, 1), lambda i, j: (i, 0))  # per-block param DMA

    cparams = pltpu.CompilerParams(
        dimension_semantics=("parallel", "parallel"),
        vmem_limit_bytes=_vmem_limit_bytes(),
    )
    out_shape = jax.ShapeDtypeStruct((R, HW), x.dtype)

    if final:
        out = pl.pallas_call(
            _bitparm_final_kernel,
            out_shape=out_shape,
            grid=grid,
            in_specs=[x_spec, p_spec, p_spec],
            out_specs=out_spec,
            compiler_params=cparams,
        )(x2, sp_h2, b2)
    else:
        assert a is not None
        th_a2 = expand(jnp.tanh(a.astype(jnp.float32)))
        out = pl.pallas_call(
            _bitparm_kernel,
            out_shape=out_shape,
            grid=grid,
            in_specs=[x_spec, p_spec, p_spec, p_spec],
            out_specs=out_spec,
            compiler_params=cparams,
        )(x2, sp_h2, b2, th_a2)

    return out.reshape(N, C, H, W)


# pure-JAX reference (mirrors the PyTorch forward exactly)
def bitparm_ref(x, h, b, a=None, *, final=False):
    t = x * jax.nn.softplus(h) + b
    if final:
        return jax.nn.sigmoid(t)
    return t + jnp.tanh(t) * jnp.tanh(a)


# ----------------------------- main ----------------------------------------- #

if __name__ == "__main__":
    key = jax.random.PRNGKey(0)
    kx, kh, kb, ka = jax.random.split(key, 4)

    # Primary test: the module's nominal small shape.
    N, C, H, W = 2, 4, 16, 16
    x = jax.random.normal(kx, (N, C, H, W), dtype=jnp.float32)

    # deterministic param init matching torch.nn.init.normal_(mean=0, std=0.01)
    h = 0.01 * jax.random.normal(kh, (1, C, 1, 1), dtype=jnp.float32)
    b = 0.01 * jax.random.normal(kb, (1, C, 1, 1), dtype=jnp.float32)
    a = 0.01 * jax.random.normal(ka, (1, C, 1, 1), dtype=jnp.float32)

    # non-final Bitparm
    out = jax.block_until_ready(bitparm_forward(x, h, b, a, final=False))
    ref = bitparm_ref(x, h, b, a, final=False)
    assert out.shape == (N, C, H, W)
    assert jnp.allclose(out, ref, atol=1e-5, rtol=1e-5)

    # final Bitparm
    out_f = jax.block_until_ready(bitparm_forward(x, h, b, final=True))
    ref_f = bitparm_ref(x, h, b, final=True)
    assert jnp.allclose(out_f, ref_f, atol=1e-5, rtol=1e-5)

    # Edge-block test: ragged extents (no wrapper pad, masked edge stores).
    N2, C2, H2, W2 = 2, 3, 10, 10
    x_e = jax.random.normal(kx, (N2, C2, H2, W2), dtype=jnp.float32)
    h_e = 0.01 * jax.random.normal(kh, (1, C2, 1, 1), dtype=jnp.float32)
    b_e = 0.01 * jax.random.normal(kb, (1, C2, 1, 1), dtype=jnp.float32)
    a_e = 0.01 * jax.random.normal(ka, (1, C2, 1, 1), dtype=jnp.float32)
    out_e = jax.block_until_ready(bitparm_forward(x_e, h_e, b_e, a_e, final=False))
    ref_e = bitparm_ref(x_e, h_e, b_e, a_e, final=False)
    assert jnp.allclose(out_e, ref_e, atol=1e-5, rtol=1e-5)

    print("KERNEL_OK")
</pallas_src>

<mosaic_0001>
module attributes {stable_mosaic.version = 11 : i64} {
  func.func @_bitparm_kernel(%arg0: i32, %arg1: i32, %arg2: memref<8x128xf32, #tpu.memory_space<vmem>>, %arg3: memref<8x1xf32, #tpu.memory_space<vmem>>, %arg4: memref<8x1xf32, #tpu.memory_space<vmem>>, %arg5: memref<8x1xf32, #tpu.memory_space<vmem>>, %arg6: memref<8x128xf32, #tpu.memory_space<vmem>>) attributes {dimension_semantics = [#tpu.dimension_semantics<parallel>, #tpu.dimension_semantics<parallel>], iteration_bounds = array<i64: 1, 2>, scalar_prefetch = 0 : i64, scratch_operands = 0 : i64, tpu.core_type = #tpu.core_type<tc>, window_params = [{transform_indices = @transform_0, window_bounds = array<i64: 8, 128>}, {transform_indices = @transform_1, window_bounds = array<i64: 8, 1>}, {transform_indices = @transform_2, window_bounds = array<i64: 8, 1>}, {transform_indices = @transform_3, window_bounds = array<i64: 8, 1>}, {transform_indices = @transform_4, window_bounds = array<i64: 8, 128>}]} {
    %c0 = arith.constant 0 : index
    %c0_0 = arith.constant 0 : index
    %0 = vector.load %arg2[%c0, %c0_0] : memref<8x128xf32, #tpu.memory_space<vmem>>, vector<8x128xf32>
    %c0_1 = arith.constant 0 : index
    %c0_2 = arith.constant 0 : index
    %1 = vector.load %arg3[%c0_1, %c0_2] : memref<8x1xf32, #tpu.memory_space<vmem>>, vector<8x1xf32>
    %2 = vector.broadcast %1 : vector<8x1xf32> to vector<8x128xf32>
    %3 = arith.mulf %0, %2 : vector<8x128xf32>
    %c0_3 = arith.constant 0 : index
    %c0_4 = arith.constant 0 : index
    %4 = vector.load %arg4[%c0_3, %c0_4] : memref<8x1xf32, #tpu.memory_space<vmem>>, vector<8x1xf32>
    %5 = vector.broadcast %4 : vector<8x1xf32> to vector<8x128xf32>
    %6 = arith.addf %3, %5 : vector<8x128xf32>
    %7 = math.tanh %6 : vector<8x128xf32>
    %c0_5 = arith.constant 0 : index
    %c0_6 = arith.constant 0 : index
    %8 = vector.load %arg5[%c0_5, %c0_6] : memref<8x1xf32, #tpu.memory_space<vmem>>, vector<8x1xf32>
    %9 = vector.broadcast %8 : vector<8x1xf32> to vector<8x128xf32>
    %10 = arith.mulf %7, %9 : vector<8x128xf32>
    %11 = arith.addf %6, %10 : vector<8x128xf32>
    %c0_7 = arith.constant 0 : index
    %c0_8 = arith.constant 0 : index
    %12 = vector.load %arg6[%c0_7, %c0_8] : memref<8x128xf32, #tpu.memory_space<vmem>>, vector<8x128xf32>
    tpu.vector_store %arg6[%c0_7, %c0_8], %11 {strides = array<i32>} : memref<8x128xf32, #tpu.memory_space<vmem>>, vector<8x128xf32>,
    return
  }
  func.func @transform_0(%arg0: i32, %arg1: i32) -> (i32, i32) {
    %c0_i32 = arith.constant 0 : i32
    return %arg0, %arg1 : i32, i32
  }
  func.func @transform_1(%arg0: i32, %arg1: i32) -> (i32, i32) {
    %c0_i32 = arith.constant 0 : i32
    %c0_i32_0 = arith.constant 0 : i32
    return %arg0, %c0_i32 : i32, i32
  }
  func.func @transform_2(%arg0: i32, %arg1: i32) -> (i32, i32) {
    %c0_i32 = arith.constant 0 : i32
    %c0_i32_0 = arith.constant 0 : i32
    return %arg0, %c0_i32 : i32, i32
  }
  func.func @transform_3(%arg0: i32, %arg1: i32) -> (i32, i32) {
    %c0_i32 = arith.constant 0 : i32
    %c0_i32_0 = arith.constant 0 : i32
    return %arg0, %c0_i32 : i32, i32
  }
  func.func @transform_4(%arg0: i32, %arg1: i32) -> (i32, i32) {
    %c0_i32 = arith.constant 0 : i32
    return %arg0, %arg1 : i32, i32
  }
}

</mosaic_0001>

<bundles_post_ra>
// kernel: tpu_custom_call.1
= control target key start
LH: loop header
LB: loop body
LE: loop exit
PB: predicated region body
PF: predicated region fallthrough
CT: control target
= control target key end

     0   :  { %9 = vsyncpa [#allocation3], 0  ;;  %s721_s0 = inlined_call_operand.vmem [shape: f32[8,256], index: 0, kind: input, shape index: {}]   ;;  %s722_s1 = inlined_call_operand.vmem [shape: f32[8,1], index: 1, kind: input, shape index: {}]   ;;  %s723_s2 = inlined_call_operand.vmem [shape: f32[8,1], index: 2, kind: input, shape index: {}]   ;;  %s724_s3 = inlined_call_operand.vmem [shape: f32[8,1], index: 3, kind: input, shape index: {}]   ;;  %s725_s4 = inlined_call_operand.hbm [shape: f32[8,256], index: 4, kind: output, shape index: {}]  }
   0x1   :  { %11 = vsyncpa [#allocation3 + $0x1], 0  ;;  %s615_s15 = smov 0   ;;  %s617_s16 = smov 0  }
   0x2   :  { %s619_s17 = smov 0   ;;  %s621_s18 = smov 0  }
   0x3   :  { %s623_s19 = smov 0   ;;  %s625_s20 = smov 0  }
   0x4 LB: > { %s435_s21 = sadd.s32 4294967295, %s587_s20   ;;  %s436_s22 = sadd.s32 4294967294, %s587_s20   ;;  %s587_s20 = sphi %s625_s20, %s17_s20   ;;  %s583_s19 = sphi %s623_s19, %s732_s19   ;;  %s579_s18 = sphi %s621_s18, %s731_s18   ;;  %s575_s17 = sphi %s619_s17, %s730_s17   ;;  %s571_s16 = sphi %s617_s16, %s729_s16   ;;  %s567_s15 = sphi %s615_s15, %s728_s15  }
   0x5   : > { %s26_s23 = sadd.s32 1, %s583_s19  ;;  %s144_s24 = sadd.s32 1, %s575_s17 }
   0x6   : > { %p27_p0 = scmp.ge.s32.totalorder %s26_s23, 2  ;;  %p154_p1 = scmp.ne.s32.totalorder %s575_s17, %s571_s16 }
   0x7   : > { %p155_p2 = scmp.eq.s32.totalorder %s435_s21, 1  ;;  %p160_p3 = scmp.ne.s32.totalorder %s571_s16, %s567_s15 }
   0x8   : > { %s734_s23 = smov (%p27_p0, %s26_s23), 0  ;;  %p161_p5 = scmp.eq.s32.totalorder %s436_s22, 1 }
   0x9   : > { %p655_p4 = por %p155_p2, %p154_p1  ;;  %s140_s26 = ssub.s32 %s583_s19, %s734_s23 }
   0xa   : > { %p442_p6 = scmp.ge.s32.totalorder %s587_s20, 1  ;;  %p142_p7 = scmp.eq.s32.totalorder %s140_s26, 0 }
   0xb   : > { %p662_p8 = por %p161_p5, %p160_p3  ;;  %p211_p9 = scmp.lt.s32.totalorder %s587_s20, 3 }
   0xc   : > { %s668_s28 = scalar_select %p142_p7, %s575_s17, %s144_s24  }
   0xd   : > { %p212_p10 = pnand %p442_p6, %p211_p9 }
   0xe   : > { %p254_p11 = scmp.lt.s32.totalorder (!%p212_p10), %s579_s18, 1  ;;  %s249_s14 = sand.u32 (!%p212_p10), 1, %s571_s16  }
   0xf   : > { %215 = sbr.rel (%p212_p10) target bundleno = 161 (0xa1), region = 36  ;;  %s443_s21 = sshll.u32 (!%p212_p10), %s249_s14, 3 }
  0x10   : > { %s446_s22 = sshll.u32 (!%p212_p10), %s579_s18, 3  ;;  %s251_s30 = scalar_lea.vmem (!%p212_p10), [#allocation2], %s443_s21 }
  0x11   : > { %s310_s29 = scalar_lea.hbm (!%p212_p10), %s725_s4, %s446_s22  ;;  %s312_s5 = sshll.u32 (!%p212_p10), %s251_s30, 4  ;;  %s313_s5 = int_to_ptr.vmem [resolvable:$true] %s312_s5 }
  0x12   : > { %s314_s6 = sshll.u32 (!%p212_p10), %s310_s29, 4  ;;  %s298_s7 = scalar_lea.sflag (!%p212_p10), [#allocation3], %s249_s14  ;;  %s315_s6 = int_to_ptr.hbm [resolvable:$true] %s314_s6 }
  0x13   : > { %s523_s8 = sshra.s32 (!%p212_p10), %s315_s6, 4  ;;  %s529_s11 = scalar_lea.hbm (!%p212_p10), %s725_s4, 16  ;;  %s524_s8 = int_to_ptr.hbm [resolvable:$true] %s523_s8 }
  0x14   : > { %v273_v0 = vld [vmem:[%s722_s1] sm:$0xff]  ;;  %v589_v2 = vmov 0   ;;  %s255_s9 = scalar_select %p254_p11, %s579_s18, 1 }
  0x15   : > { %v288_v1 = vld [vmem:[%s724_s3] sm:$0xff]  ;;  %505 = vset.pattern.permute.xlu0 %v589_v2  ;;  %506 = vset.pattern.permute.xlu1 %v589_v2  ;;  %p530_p1 = scmp.lt.s32.totalorder %s524_s8, %s725_s4 }
  0x16   : > { %276 = vperm.xlu0 %505, %v273_v0   ;;  %291 = vperm.xlu1 %506, %v288_v1   ;;  %v280_v3 = vld [vmem:[%s723_s2] sm:$0xff]  ;;  %s444_s10 = sshll.u32 %s255_s9, 3  ;;  %s525_s9 = scalar_lea.hbm %s524_s8, 8 }
  0x17   : > { %s259_s13 = scalar_lea.vmem %s721_s0, %s444_s10  ;;  %p526_p12 = scmp.ne.s32.totalorder %s524_s8, %s525_s9 }
  0x18   : > { %v272_v5 = vld [vmem:[%s259_s13] sm:$0xff]  ;;  %p531_p2 = scmp.lt.s32.totalorder %s529_s11, %s525_s9 }
  0x19   : > { %p527_p13 = pnand %p526_p12, %p655_p4 }
  0x1a   : > { %p532_p3 = por %p531_p2, %p530_p1 }
  0x1b   : > { %p528_p0 = pneg %p527_p13 }
  0x1d   : > { %p533_p5 = pnand %p532_p3, %p528_p0 }
  0x1e   : > { %283 = vperm.xlu0 %505, %v280_v3  }
  0x88   : > { %v277_v4 = vpop.permute.xlu0 %276  ;;  %v292_v9 = vpop.permute.xlu1 %291 }
  0x89   : > { %v279_v6 = vmul.f32 %v277_v4, %v272_v5 }
  0x90   : > { %v284_v7 = vpop.permute.xlu0 %283 }
  0x91   : > { %v286_v8 = vadd.f32 %v284_v7, %v279_v6 }
  0x93   : > { %507 = vtanh.f32 %v286_v8 }
  0x99   : > { %v508_v10 = vpop.eup %507 }
  0x9a   : > { %v294_v11 = vmul.f32 %v508_v10, %v292_v9 }
  0x9c   : > { %v295_v12 = vadd.f32 %v294_v11, %v286_v8 }
  0x9e   : > { %296 = vst [vmem:[%s251_s30] sm:$0xff] %v295_v12 }
  0x9f   : > { %536 = shalt.err (!%p533_p5)
}
  0xa0   : > { %449 = dma.vmem_to_hbm [thread:$0]  (%p655_p4), %s313_s5, 128, %s315_s6, %s298_s7  }
  0xa1 PF: > { %p455_p6 = scmp.ge.s32.totalorder %s587_s20, 2  ;;  %s326_s14 = sand.u32 1, %s567_s15  }
  0xa2   : > { %s327_s21 = scalar_lea.sflag [#allocation3], %s326_s14 }
  0xa3   : > { %p452_p7 = pnand %p455_p6, %p662_p8 }
  0xa5   : > { %p453_p9 = pneg %p452_p7 }
  0xa7   : > { %562 = dma.done.wait (%p453_p9), %s327_s21, 128  }
  0xa8   : > { %564 = vsyncadd (%p453_p9), %s327_s21, 4294967168  ;;  %s17_s20 = sadd.s32 1, %s587_s20   ;;  %s728_s15 = smov %s571_s16 }
  0xa9   : > { %p14_p10 = scmp.ge.s32.totalorder %s17_s20, 4   ;;  %s729_s16 = smov %s575_s17 }
  0xaa   : > { %s730_s17 = smov %s668_s28  ;;  %s731_s18 = smov %s583_s19 }
  0xab   : > { %s732_s19 = smov %s734_s23  ;;  %16 = sbr.rel (!%p14_p10) target bundleno = 4 (0x4), region = 80 }
  0xb0   :  { %333 = vsyncpa [#allocation3], 1 }
  0xb1   :  { %335 = vsyncpa [#allocation3 + $0x1], 1 }

</bundles_post_ra>
